<compile_context>
chip_gen: v5e
topology: v5e:2x2
jax: 0.10.0
libtpu: 0.0.40
codegen_flags: <defaults>
</compile_context>

<pallas_src>
import functools

import jax
import jax.numpy as jnp
import numpy as np
from jax.experimental import pallas as pl
from jax.experimental.pallas import tpu as pltpu


def _context_modeling_kernel(x_ref, w_ref, o_ref, m_ref, l_ref, acc_ref, *,
                             hw, thw):
    # x_ref:   (1, C, THW) VMEM, native dtype
    # w_ref:   (1, C)      VMEM, native dtype (1x1 conv weight, out-channels=1)
    # o_ref:   (1, 1, C)   VMEM output block (lane-dense along C)
    # m_ref:   (1, 1) f32  running max          (online softmax)
    # l_ref:   (1, 1) f32  running sum of exp
    # acc_ref: (1, C) f32  running (unnormalized) context
    h = pl.program_id(1)

    @pl.when(h == 0)
    def _init():
        m_ref[...] = jnp.full_like(m_ref, -jnp.inf)
        l_ref[...] = jnp.zeros_like(l_ref)
        acc_ref[...] = jnp.zeros_like(acc_ref)

    x = x_ref[0]      # (C, THW), native dtype
    w = w_ref[...]    # (1, C),   native dtype

    # 1x1 conv with a single output channel == MXU mat-vec: (1,C) @ (C,THW).
    score = jnp.dot(w, x, preferred_element_type=jnp.float32)   # (1, THW) f32

    if hw % thw != 0:
        # Mask spatial padding so it contributes neither to the softmax
        # denominator nor to the pooled context (exp(-inf) == 0).
        pos = h * thw + jax.lax.broadcasted_iota(jnp.int32, score.shape, 1)
        score = jnp.where(pos < hw, score, -jnp.inf)

    # Online softmax update (unnormalized; normalization folded into epilogue).
    m_prev = m_ref[...]
    m_new = jnp.maximum(m_prev, jnp.max(score, axis=-1, keepdims=True))
    alpha = jnp.exp(m_prev - m_new)                              # (1, 1)
    e = jnp.exp(score - m_new)                                   # (1, THW) f32
    l_ref[...] = alpha * l_ref[...] + jnp.sum(e, axis=-1, keepdims=True)
    m_ref[...] = m_new

    # Weighted channel pooling on the MXU: (1,THW) x (C,THW)^T -> (1, C).
    # Trans-B contraction (same dimension_numbers as q @ k.T in flash attn).
    part = jax.lax.dot_general(
        e.astype(x.dtype), x, (((1,), (1,)), ((), ())),
        preferred_element_type=jnp.float32)                      # (1, C) f32
    acc_ref[...] = alpha * acc_ref[...] + part

    @pl.when(h == pl.num_programs(1) - 1)
    def _finalize():
        o_ref[0] = (acc_ref[...] / l_ref[...]).astype(o_ref.dtype)


def _choose_spatial_tile(hw, c, itemsize):
    """Full HW for small maps; otherwise a multiple of 128 sized so one x tile
    stays ~<=4 MiB (double-buffered ~8 MiB -> fits the v5e 16 MiB scoped
    default, v6e 32 MiB, and v7x's 64 MiB physical VMEM)."""
    if hw <= 1024:
        return hw
    budget = 4 * 1024 * 1024                       # bytes per x tile
    t = budget // (c * itemsize)
    return int(max(128, min(4096, (t // 128) * 128)))


def context_modeling(x, weight, bias=None, *, spatial_tile=None):
    """GCNet context modeling.

    x: (B, C, H, W); weight: (1, C, 1, 1); bias: (1,). Returns (B, C, 1, 1).
    The conv bias is accepted for API parity but unused: softmax is
    shift-invariant, so the scalar bias never changes the output.
    """
    del bias
    B, C, H, W = x.shape
    HW = H * W
    x2 = x.reshape(B, C, HW)
    w2 = weight.reshape(1, C)

    thw = spatial_tile if spatial_tile is not None else _choose_spatial_tile(
        HW, C, x.dtype.itemsize)
    n_hw = pl.cdiv(HW, thw)
    hw_pad = n_hw * thw
    if hw_pad != HW:
        # Pad with zeros; padded columns are masked to -inf inside the kernel.
        x2 = jnp.pad(x2, ((0, 0), (0, 0), (0, hw_pad - HW)))

    kernel = functools.partial(_context_modeling_kernel, hw=HW, thw=thw)

    out = pl.pallas_call(
        kernel,
        out_shape=jax.ShapeDtypeStruct((B, 1, C), x.dtype),
        grid=(B, n_hw),
        in_specs=[
            pl.BlockSpec((1, C, thw), lambda b, h: (b, 0, h)),
            pl.BlockSpec((1, C), lambda b, h: (0, 0)),
        ],
        out_specs=pl.BlockSpec((1, 1, C), lambda b, h: (b, 0, 0)),
        scratch_shapes=[
            pltpu.VMEM((1, 1), jnp.float32),   # running max m
            pltpu.VMEM((1, 1), jnp.float32),   # running sum l
            pltpu.VMEM((1, C), jnp.float32),   # context accumulator
        ],
        compiler_params=pltpu.CompilerParams(
            dimension_semantics=("parallel", "arbitrary")),
    )(x2, w2)
    return out.reshape(B, C, 1, 1)


def _context_modeling_ref_f64(x, weight, bias):
    """Host-side float64 reference of the PyTorch forward."""
    x = np.asarray(x, dtype=np.float64)
    w = np.asarray(weight, dtype=np.float64).reshape(-1)
    b = float(np.asarray(bias, dtype=np.float64).reshape(-1)[0])
    B, C = x.shape[0], x.shape[1]
    xf = x.reshape(B, C, -1)
    score = np.einsum("bcn,c->bn", xf, w) + b
    score -= score.max(axis=-1, keepdims=True)
    p = np.exp(score)
    p /= p.sum(axis=-1, keepdims=True)
    ctx = np.einsum("bcn,bn->bc", xf, p)
    return ctx.reshape(B, C, 1, 1)


if __name__ == "__main__":
    key = jax.random.PRNGKey(0)

    # Case 1: small map -> single spatial tile per batch (no masking path).
    B, C, H, W = 2, 4, 16, 16
    kx, kw, kb, k2 = jax.random.split(key, 4)
    x = jax.random.normal(kx, (B, C, H, W), dtype=jnp.float32)
    weight = jax.random.normal(kw, (1, C, 1, 1), dtype=jnp.float32) * 0.1
    bias = jax.random.normal(kb, (1,), dtype=jnp.float32) * 0.1

    out = jax.block_until_ready(context_modeling(x, weight, bias))
    assert out.shape == (B, C, 1, 1), out.shape
    ref = _context_modeling_ref_f64(x, weight, bias)
    err = float(np.max(np.abs(np.asarray(out, dtype=np.float64) - ref)))
    assert err < 5e-3, f"case1 max err {err}"

    # Case 2: force spatial tiling + padding mask + multi-step online softmax.
    B2, C2, H2, W2 = 2, 8, 36, 36            # HW=1296 -> 3 tiles of 512 (+pad)
    kx2, kw2, kb2 = jax.random.split(k2, 3)
    xb = jax.random.normal(kx2, (B2, C2, H2, W2), dtype=jnp.float32)
    weightb = jax.random.normal(kw2, (1, C2, 1, 1), dtype=jnp.float32) * 0.1
    biasb = jax.random.normal(kb2, (1,), dtype=jnp.float32) * 0.1

    outb = jax.block_until_ready(
        context_modeling(xb, weightb, biasb, spatial_tile=512))
    assert outb.shape == (B2, C2, 1, 1), outb.shape
    refb = _context_modeling_ref_f64(xb, weightb, biasb)
    errb = float(np.max(np.abs(np.asarray(outb, dtype=np.float64) - refb)))
    assert errb < 5e-3, f"case2 max err {errb}"

    print("KERNEL_OK")
</pallas_src>

<mosaic_0001>
module attributes {stable_mosaic.version = 11 : i64} {
  func.func @_context_modeling_kernel(%arg0: i32, %arg1: i32, %arg2: memref<1x4x256xf32, #tpu.memory_space<vmem>>, %arg3: memref<1x4xf32, #tpu.memory_space<vmem>>, %arg4: memref<1x1x4xf32, #tpu.memory_space<vmem>>, %arg5: memref<1x1xf32, #tpu.memory_space<vmem>>, %arg6: memref<1x1xf32, #tpu.memory_space<vmem>>, %arg7: memref<1x4xf32, #tpu.memory_space<vmem>>) attributes {dimension_semantics = [#tpu.dimension_semantics<parallel>, #tpu.dimension_semantics<arbitrary>], iteration_bounds = array<i64: 2, 1>, scalar_prefetch = 0 : i64, scratch_operands = 3 : i64, tpu.core_type = #tpu.core_type<tc>, window_params = [{transform_indices = @transform_0, window_bounds = array<i64: 1, 4, 256>}, {pipeline_mode = #tpu.pipeline_mode<synchronous>, transform_indices = @transform_1, window_bounds = array<i64: 1, 4>}, {transform_indices = @transform_2, window_bounds = array<i64: 1, 1, 4>}]} {
    %c0_i32 = arith.constant 0 : i32
    %0 = arith.cmpi eq, %arg1, %c0_i32 : i32
    %1 = arith.extui %0 : i1 to i32
    %c0_i32_0 = arith.constant 0 : i32
    %2 = arith.cmpi ne, %1, %c0_i32_0 : i32
    scf.if %2 {
      %cst_22 = arith.constant 0xFF800000 : f32
      %32 = vector.broadcast %cst_22 : f32 to vector<1x1xf32>
      %c0_23 = arith.constant 0 : index
      %c0_24 = arith.constant 0 : index
      %33 = vector.load %arg5[%c0_23, %c0_24] : memref<1x1xf32, #tpu.memory_space<vmem>>, vector<1x1xf32>
      tpu.vector_store %arg5[%c0_23, %c0_24], %32 {strides = array<i32>} : memref<1x1xf32, #tpu.memory_space<vmem>>, vector<1x1xf32>,
      %cst_25 = arith.constant 0.000000e+00 : f32
      %34 = vector.broadcast %cst_25 : f32 to vector<1x1xf32>
      %c0_26 = arith.constant 0 : index
      %c0_27 = arith.constant 0 : index
      %35 = vector.load %arg6[%c0_26, %c0_27] : memref<1x1xf32, #tpu.memory_space<vmem>>, vector<1x1xf32>
      tpu.vector_store %arg6[%c0_26, %c0_27], %34 {strides = array<i32>} : memref<1x1xf32, #tpu.memory_space<vmem>>, vector<1x1xf32>,
      %cst_28 = arith.constant 0.000000e+00 : f32
      %36 = vector.broadcast %cst_28 : f32 to vector<1x4xf32>
      %c0_29 = arith.constant 0 : index
      %c0_30 = arith.constant 0 : index
      %37 = vector.load %arg7[%c0_29, %c0_30] : memref<1x4xf32, #tpu.memory_space<vmem>>, vector<1x4xf32>
      tpu.vector_store %arg7[%c0_29, %c0_30], %36 {strides = array<i32>} : memref<1x4xf32, #tpu.memory_space<vmem>>, vector<1x4xf32>,
    } else {
    }
    %c0 = arith.constant 0 : index
    %c0_1 = arith.constant 0 : index
    %c0_2 = arith.constant 0 : index
    %3 = vector.load %arg2[%c0, %c0_1, %c0_2] : memref<1x4x256xf32, #tpu.memory_space<vmem>>, vector<1x4x256xf32>
    %4 = vector.shape_cast %3 : vector<1x4x256xf32> to vector<4x256xf32>
    %c0_3 = arith.constant 0 : index
    %c0_4 = arith.constant 0 : index
    %5 = vector.load %arg3[%c0_3, %c0_4] : memref<1x4xf32, #tpu.memory_space<vmem>>, vector<1x4xf32>
    %cst = arith.constant dense<0.000000e+00> : vector<1x256xf32>
    %6 = tpu.matmul %5, %4, %cst {dimension_numbers = #tpu.dot_dimension_numbers<[1], [0], [0], [1], [0, 0, 1, 1], [], []>} : vector<1x4xf32>, vector<4x256xf32>, vector<1x256xf32> -> vector<1x256xf32>
    %c0_5 = arith.constant 0 : index
    %c0_6 = arith.constant 0 : index
    %7 = vector.load %arg5[%c0_5, %c0_6] : memref<1x1xf32, #tpu.memory_space<vmem>>, vector<1x1xf32>
    %cst_7 = arith.constant dense<0xFF800000> : vector<1xf32>
    %8 = vector.multi_reduction <maximumf>, %6, %cst_7 [1] : vector<1x256xf32> to vector<1xf32>
    %9 = vector.shape_cast %8 : vector<1xf32> to vector<1x1xf32>
    %10 = arith.maximumf %7, %9 : vector<1x1xf32>
    %11 = arith.subf %7, %10 : vector<1x1xf32>
    %12 = math.exp %11 : vector<1x1xf32>
    %13 = vector.broadcast %10 : vector<1x1xf32> to vector<1x256xf32>
    %14 = arith.subf %6, %13 : vector<1x256xf32>
    %15 = math.exp %14 : vector<1x256xf32>
    %c0_8 = arith.constant 0 : index
    %c0_9 = arith.constant 0 : index
    %16 = vector.load %arg6[%c0_8, %c0_9] : memref<1x1xf32, #tpu.memory_space<vmem>>, vector<1x1xf32>
    %17 = arith.mulf %12, %16 : vector<1x1xf32>
    %cst_10 = arith.constant dense<0.000000e+00> : vector<1xf32>
    %18 = vector.multi_reduction <add>, %15, %cst_10 [1] : vector<1x256xf32> to vector<1xf32>
    %19 = vector.shape_cast %18 : vector<1xf32> to vector<1x1xf32>
    %20 = arith.addf %17, %19 : vector<1x1xf32>
    %c0_11 = arith.constant 0 : index
    %c0_12 = arith.constant 0 : index
    %21 = vector.load %arg6[%c0_11, %c0_12] : memref<1x1xf32, #tpu.memory_space<vmem>>, vector<1x1xf32>
    tpu.vector_store %arg6[%c0_11, %c0_12], %20 {strides = array<i32>} : memref<1x1xf32, #tpu.memory_space<vmem>>, vector<1x1xf32>,
    %c0_13 = arith.constant 0 : index
    %c0_14 = arith.constant 0 : index
    %22 = vector.load %arg5[%c0_13, %c0_14] : memref<1x1xf32, #tpu.memory_space<vmem>>, vector<1x1xf32>
    tpu.vector_store %arg5[%c0_13, %c0_14], %10 {strides = array<i32>} : memref<1x1xf32, #tpu.memory_space<vmem>>, vector<1x1xf32>,
    %cst_15 = arith.constant dense<0.000000e+00> : vector<1x4xf32>
    %23 = tpu.matmul %15, %4, %cst_15 {dimension_numbers = #tpu.dot_dimension_numbers<[1], [1], [0], [0], [0, 0, 1, 0], [], []>} : vector<1x256xf32>, vector<4x256xf32>, vector<1x4xf32> -> vector<1x4xf32>
    %c0_16 = arith.constant 0 : index
    %c0_17 = arith.constant 0 : index
    %24 = vector.load %arg7[%c0_16, %c0_17] : memref<1x4xf32, #tpu.memory_space<vmem>>, vector<1x4xf32>
    %25 = vector.broadcast %12 : vector<1x1xf32> to vector<1x4xf32>
    %26 = arith.mulf %25, %24 : vector<1x4xf32>
    %27 = arith.addf %26, %23 : vector<1x4xf32>
    %c0_18 = arith.constant 0 : index
    %c0_19 = arith.constant 0 : index
    %28 = vector.load %arg7[%c0_18, %c0_19] : memref<1x4xf32, #tpu.memory_space<vmem>>, vector<1x4xf32>
    tpu.vector_store %arg7[%c0_18, %c0_19], %27 {strides = array<i32>} : memref<1x4xf32, #tpu.memory_space<vmem>>, vector<1x4xf32>,
    %c0_i32_20 = arith.constant 0 : i32
    %29 = arith.cmpi eq, %arg1, %c0_i32_20 : i32
    %30 = arith.extui %29 : i1 to i32
    %c0_i32_21 = arith.constant 0 : i32
    %31 = arith.cmpi ne, %30, %c0_i32_21 : i32
    scf.if %31 {
      %c0_22 = arith.constant 0 : index
      %c0_23 = arith.constant 0 : index
      %32 = vector.load %arg7[%c0_22, %c0_23] : memref<1x4xf32, #tpu.memory_space<vmem>>, vector<1x4xf32>
      %c0_24 = arith.constant 0 : index
      %c0_25 = arith.constant 0 : index
      %33 = vector.load %arg6[%c0_24, %c0_25] : memref<1x1xf32, #tpu.memory_space<vmem>>, vector<1x1xf32>
      %34 = vector.broadcast %33 : vector<1x1xf32> to vector<1x4xf32>
      %35 = arith.divf %32, %34 : vector<1x4xf32>
      %c0_26 = arith.constant 0 : index
      %c0_27 = arith.constant 0 : index
      %c0_28 = arith.constant 0 : index
      %36 = vector.load %arg4[%c0_26, %c0_27, %c0_28] : memref<1x1x4xf32, #tpu.memory_space<vmem>>, vector<1x1x4xf32>
      %37 = vector.shape_cast %36 : vector<1x1x4xf32> to vector<1x4xf32>
      %38 = vector.shape_cast %35 : vector<1x4xf32> to vector<1x1x4xf32>
      tpu.vector_store %arg4[%c0_26, %c0_27, %c0_28], %38 {strides = array<i32>} : memref<1x1x4xf32, #tpu.memory_space<vmem>>, vector<1x1x4xf32>,
    } else {
    }
    return
  }
  func.func @transform_0(%arg0: i32, %arg1: i32) -> (i32, i32, i32) {
    %c0_i32 = arith.constant 0 : i32
    %c0_i32_0 = arith.constant 0 : i32
    return %arg0, %c0_i32, %arg1 : i32, i32, i32
  }
  func.func @transform_1(%arg0: i32, %arg1: i32) -> (i32, i32) {
    %c0_i32 = arith.constant 0 : i32
    %c0_i32_0 = arith.constant 0 : i32
    %c0_i32_1 = arith.constant 0 : i32
    return %c0_i32, %c0_i32_0 : i32, i32
  }
  func.func @transform_2(%arg0: i32, %arg1: i32) -> (i32, i32, i32) {
    %c0_i32 = arith.constant 0 : i32
    %c0_i32_0 = arith.constant 0 : i32
    %c0_i32_1 = arith.constant 0 : i32
    return %arg0, %c0_i32, %c0_i32_0 : i32, i32, i32
  }
}

</mosaic_0001>

<bundles_post_ra>
// kernel: tpu_custom_call.1
= control target key start
LH: loop header
LB: loop body
LE: loop exit
PB: predicated region body
PF: predicated region fallthrough
CT: control target
= control target key end

     0   :  { %7 = vsyncpa [#allocation6], 0  ;;  %s907_s0 = inlined_call_operand.hbm [shape: f32[2,4,256], index: 0, kind: input, shape index: {}]   ;;  %s908_s1 = inlined_call_operand.hbm [shape: f32[1,4], index: 1, kind: input, shape index: {}]   ;;  %s909_s2 = inlined_call_operand.hbm [shape: f32[2,1,4], index: 2, kind: output, shape index: {}]  }
   0x1   :  { %9 = vsyncpa [#allocation6 + $0x1], 0 }
   0x2   :  { %10 = vsyncpa [#allocation9], 0 }
   0x3   :  { %11 = vsyncpa [#allocation7], 0 }
   0x4   :  { %13 = vsyncpa [#allocation7 + $0x1], 0  ;;  %s746_s9 = smov 0   ;;  %s748_s10 = smov 0  }
   0x5   :  { %s750_s11 = smov 0   ;;  %s752_s12 = smov 0  }
   0x6   :  { %s754_s13 = smov 0   ;;  %s756_s14 = smov 0  }
   0x7 LB: > { %s474_s15 = sadd.s32 4294967295, %s725_s14   ;;  %s475_s16 = sadd.s32 4294967294, %s725_s14   ;;  %s725_s14 = sphi %s756_s14, %s19_s14   ;;  %s721_s13 = sphi %s754_s13, %s921_s13   ;;  %s717_s12 = sphi %s752_s12, %s920_s12   ;;  %s713_s11 = sphi %s750_s11, %s919_s11   ;;  %s709_s10 = sphi %s748_s10, %s918_s10   ;;  %s705_s9 = sphi %s746_s9, %s917_s9  }
   0x8   : > { %p53_p0 = scmp.ne.s32.totalorder %s709_s10, %s705_s9  ;;  %p780_p1 = scmp.eq.s32.totalorder %s474_s15, 0 }
   0x9   : > { %p784_p2 = scmp.eq.s32.totalorder %s474_s15, 1  ;;  %p104_p3 = scmp.eq.s32.totalorder %s475_s16, 1 }
   0xa   : > { %p790_p4 = por %p780_p1, %p53_p0  ;;  %p476_p5 = scmp.ge.s32.totalorder %s725_s14, 1 }
   0xb   : > { %p795_p6 = por %p104_p3, %p53_p0  ;;  %p111_p7 = scmp.lt.s32.totalorder %s725_s14, 3 }
   0xc   : > { %s123_s23 = sshll.u32 %s908_s1, 4  ;;  %p478_p9 = scmp.ge.s32.totalorder %s725_s14, 2  ;;  %s124_s23 = int_to_ptr.hbm [resolvable:$true] %s123_s23 }
   0xd   : > { %p803_p8 = pnand %p476_p5, %p111_p7  ;;  %s727_s25 = smov [#allocation8]  }
   0xe   : > { %s125_s26 = sshll.u32 %s727_s25, 4  ;;  %s31_s27 = sadd.s32 1, %s721_s13  ;;  %s126_s26 = int_to_ptr.vmem [resolvable:$true] %s125_s26 }
   0xf   : > { %p500_p10 = pneg %p803_p8  ;;  %p33_p12 = scmp.ge.s32.totalorder %s31_s27, 2 }
  0x10   : > { %s40_s28 = sadd.s32 1, %s713_s11  ;;  %p47_p13 = scmp.ne.s32.totalorder %s713_s11, %s709_s10 }
  0x11   : > { %p501_p11 = pnand %p500_p10, %p780_p1  ;;  %p48_p0 = scmp.eq.s32.totalorder %s725_s14, 0 }
  0x12   : > { %s923_s27 = smov (%p33_p12, %s31_s27), 0  ;;  %p825_p5 = por %p784_p2, %p47_p13 }
  0x13   : > { %503 = dma.hbm_to_vmem [thread:$0]  (!%p501_p11), %s124_s23, 16, %s126_s26, [#allocation9]  }
  0x14   : > { %p819_p3 = por %p48_p0, %p47_p13  ;;  %s35_s3 = ssub.s32 %s721_s13, %s923_s27 }
  0x15   : > { %p513_p7 = scmp.lt.s32.totalorder %s725_s14, 2  ;;  %p38_p10 = scmp.eq.s32.totalorder %s35_s3, 0 }
  0x16   : > { %s136_s4 = sand.u32 1, %s713_s11   ;;  %s491_s7 = sshll.u32 %s721_s13, 3 }
  0x17   : > { %s479_s5 = sshll.u32 %s136_s4, 3  ;;  %s147_s16 = scalar_lea.hbm %s907_s0, %s491_s7 }
  0x18   : > { %s834_s6 = scalar_select %p38_p10, %s713_s11, %s40_s28  }
  0x19   : > { %s140_s21 = scalar_lea.vmem [#allocation5], %s479_s5  ;;  %s149_s18 = sshll.u32 %s147_s16, 4  ;;  %s150_s18 = int_to_ptr.hbm [resolvable:$true] %s149_s18 }
  0x1a   : > { %s151_s22 = sshll.u32 %s140_s21, 4  ;;  %p505_p2 = pnand %p513_p7, %p819_p3  ;;  %s152_s22 = int_to_ptr.vmem [resolvable:$true] %s151_s22 }
  0x1b   : > { %s137_s23 = scalar_lea.sflag [#allocation6], %s136_s4  ;;  %160 = sbr.rel (%p803_p8) target bundleno = 689 (0x2b1), region = 28 }
  0x1c   : > { %507 = dma.hbm_to_vmem [thread:$0]  (!%p505_p2), %s150_s18, 128, %s152_s22, %s137_s23  }
  0x1d   : > { %s845_s25 = sand.u32 (!%p803_p8), 1, %s709_s10  }
  0x1e   : > { %s483_s26 = sshll.u32 (!%p803_p8), %s845_s25, 3  ;;  %s163_s28 = scalar_lea.sflag (!%p803_p8), [#allocation6], %s845_s25 }
  0x1f   : > { %s166_s3 = scalar_lea.vmem (!%p803_p8), [#allocation5], %s483_s26 }
  0x20   : > { %692 = dma.done.wait (%p790_p4), %s163_s28, 128  }
  0x21   : > { %694 = vsyncadd (%p790_p4), %s163_s28, 4294967168 }
  0x22   : > { %696 = dma.done.wait (%p780_p1), [#allocation9], 16  }
  0x23   : > { %698 = vsyncadd (%p780_p1), [#allocation9], 4294967280  ;;  %v202_v0 = vld [vmem:[%s166_s3] sm:$0xff]  ;;  %vm212_vm0 = vcmask 1043456   ;;  %v203_v1 = vld [vmem:[#allocation8] sm:$0x1]  ;;  %s383_s24 = scalar_lea.hbm %s909_s2, %s717_s12 }
  0x24   : > { %205 = vst [vmem:[#allocation1] ss:$2 sm:$0xff] %v202_v0  ;;  %vm208_vm1 = vcmask 31744   ;;  %vm197_vm2 = vcmask 0   ;;  %v728_v4 = vmov -inf   ;;  %vm258_vm3 = vcmask 1040384  }
  0x25   : > { %198 = vst.msk [vmem:[#allocation2] sm:$0x1] %vm197_vm2, %v728_v4  ;;  %v729_v10 = vmov 0   ;;  %v730_v11 = vmov 0.0   ;;  %vm200_vm4 = vcmask 24576   ;;  %s191_s29 = scalar_lea.vmem [#allocation10], %s845_s25 }
  0x26   : > { %568 = vset.pattern.permute.xlu0 %v729_v10  ;;  %570 = vset.pattern.permute.xlu2 %v729_v10  ;;  %199 = vst.msk [vmem:[#allocation3] sm:$0x1] %vm197_vm2, %v730_v11  ;;  %s385_s4 = sshll.u32 %s191_s29, 4  ;;  %s387_s5 = sshll.u32 %s383_s24, 4  ;;  %s386_s4 = int_to_ptr.vmem [resolvable:$true] %s385_s4  ;;  %s388_s5 = int_to_ptr.hbm [resolvable:$true] %s387_s5 }
  0x27   : > { %569 = vset.pattern.permute.xlu1 %v729_v10  ;;  %201 = vst.msk [vmem:[#allocation4] sm:$0x1] %vm200_vm4, %v730_v11  ;;  %s375_s7 = scalar_lea.sflag [#allocation7], %s845_s25  ;;  %s653_s12 = sshra.s32 %s388_s5, 4  ;;  %s654_s12 = int_to_ptr.hbm [resolvable:$true] %s653_s12 }
  0x28   : > { %s655_s8 = scalar_lea.hbm %s654_s12, 1  ;;  %s659_s21 = scalar_lea.hbm %s909_s2, 2 }
  0x29   : > { %p656_p1 = scmp.ne.s32.totalorder %s654_s12, %s655_s8  ;;  %p660_p11 = scmp.lt.s32.totalorder %s654_s12, %s909_s2 }
  0x2a   : > { %p661_p12 = scmp.lt.s32.totalorder %s659_s21, %s655_s8 }
  0x2b   : > { %v206_v2 = vld.sshfl [vmem:[#allocation1] sm:$0xff pattern:$0x75316420]  ;;  %v207_v3 = vld.sshfl [vmem:[#allocation1 + $0x8] sm:$0xff pattern:$0x75316420]  ;;  %p657_p4 = pnand %p656_p1, %p825_p5 }
  0x2c   : > { %485 = vmatpush.msk.msra.mxu0 %vm212_vm0, %v206_v2  ;;  %487 = vmatpush.msk.msra.mxu1 %vm212_vm0, %v207_v3  ;;  %291 = vst [vmem:[#allocation1] ss:$2 sm:$0xff] %v202_v0  ;;  %v257_v12 = vld [vmem:[#allocation2] sm:$0x1]  ;;  %p662_p13 = por %p661_p12, %p660_p11 }
  0x2d   : > { %486 = vmatmul.msk.f32.vlgmr.msra.gmra.mxu0 %vm208_vm1, %v203_v1  ;;  %488 = vmatmul.msk.f32.vlgmr.msra.gmra.mxu1 %vm208_vm1, %v203_v1  ;;  %v280_v31 = vld [vmem:[#allocation3] sm:$0x1]  ;;  %p658_p8 = pneg %p657_p4 }
  0x2e   : > { %v336_v38 = vld [vmem:[#allocation4] sm:$0x1] }
  0x2f   : > { %p663_p0 = pnand %p662_p13, %p658_p8 }
  0x33   : > { %v292_v18 = vld.sshfl [vmem:[#allocation1] sm:$0xff pattern:$0x75316420]  ;;  %v293_v19 = vld.sshfl [vmem:[#allocation1 + $0x8] sm:$0xff pattern:$0x75316420] }
  0x34   : > { %311 = vmatpush.xpose.msra.mxu2 %v292_v18  ;;  %331 = vmatpush.xpose.msra.mxu3 %v293_v19 }
  0xaa   : > { %v234_v5 = vpop.f32.mrf.mxu0  ;;  %v254_v6 = vpop.f32.mrf.mxu1 }
  0xab   : > { %v259_v7 = vsel %vm258_vm3, %v234_v5, -inf  ;;  %v260_v8 = vsel %vm258_vm3, %v254_v6, -inf }
  0xac   : > { %v261_v9 = vmax.f32 %v259_v7, %v260_v8 }
  0xae   : > { %262 = vmax.xlane.f32.xlu0 %v261_v9 }
 0x121   : > { %v263_v13 = vpop.xlane.xlu0 %262 }
 0x122   : > { %v264_v14 = vmax.f32 %v257_v12, %v263_v13 }
 0x124   : > { %v265_v15 = vsub.f32 %v257_v12, %v264_v14  ;;  %290 = vst.msk [vmem:[#allocation2] sm:$0x1] %vm197_vm2, %v264_v14  ;;  %270 = vperm.xlu0 %568, %v264_v14  }
 0x126   : > { %v266_v16 = vmul.f32 1.442695, %v265_v15 }
 0x128   : > { %571 = vpow2.f32 %v266_v16 }
 0x12e   : > { %v572_v17 = vpop.eup %571 }
 0x12f   : > { %339 = vperm.xlu2 %570, %v572_v17   ;;  %v281_v32 = vmul.f32 %v572_v17, %v280_v31 }
 0x189   : > { %v340_v35 = vpop.permute.xlu2 %339 }
 0x18a   : > { %v342_v36 = vperm.slane %v340_v35, 0 }
 0x18c   : > { %v343_v41 = vmul.f32 %v342_v36, %v336_v38 }
 0x196   : > { %v271_v20 = vpop.permute.xlu0 %270 }
 0x197   : > { %v273_v21 = vperm.slane %v271_v20, 0 }
 0x199   : > { %v274_v22 = vsub.f32 %v234_v5, %v273_v21  ;;  %v275_v23 = vsub.f32 %v254_v6, %v273_v21 }
 0x19b   : > { %v276_v24 = vmul.f32 1.442695, %v274_v22  ;;  %v278_v25 = vmul.f32 1.442695, %v275_v23 }
 0x19d   : > { %573 = vpow2.f32 %v276_v24 }
 0x19e   : > { %575 = vpow2.f32 %v278_v25 }
 0x1a3   : > { %v574_v26 = vpop.eup %573 }
 0x1a4   : > { %v576_v27 = vpop.eup %575  ;;  %312 = vmatmul.f32.vlgmr.msra.gmra.mxu2 %v574_v26  ;;  %v282_v28 = vsel %vm258_vm3, %v574_v26, 0.0 }
 0x1a5   : > { %332 = vmatmul.f32.vlgmr.msra.gmra.mxu3 %v576_v27  ;;  %v283_v29 = vsel %vm258_vm3, %v576_v27, 0.0 }
 0x1a6   : > { %v284_v30 = vadd.f32 %v283_v29, %v282_v28 }
 0x1a8   : > { %285 = vadd.xlane.f32.xlu1 %v284_v30 }
 0x21b   : > { %v286_v33 = vpop.xlane.xlu1 %285 }
 0x21c   : > { %v287_v34 = vadd.f32 %v286_v33, %v281_v32 }
 0x21e   : > { %289 = vst.msk [vmem:[#allocation3] sm:$0x1] %vm197_vm2, %v287_v34 }
 0x225   : > { %v351_v37 = vld [vmem:[#allocation3] sm:$0x1] }
 0x226   : > { %354 = vperm.xlu1 %569, %v351_v37  }
 0x227   : > { %v313_v39 = vpop.f32.mrf.mxu2 }
 0x228   : > { %v333_v40 = vpop.f32.mrf.mxu3 }
 0x229   : > { %v334_v42 = vadd.f32 %v333_v40, %v313_v39 }
 0x22b   : > { %v344_v43 = vadd.f32 %v343_v41, %v334_v42 }
 0x22d   : > { %346 = vst.msk [vmem:[#allocation4] sm:$0x1] %vm200_vm4, %v344_v43 }
 0x234   : > { %v350_v55 = vld [vmem:[#allocation4] sm:$0x1] }
 0x298   : > { %v355_v44 = vpop.permute.xlu1 %354 }
 0x299   : > { %v357_v45 = vperm.slane %v355_v44, 0 }
 0x29b   : > { %577 = vrcp.f32 %v357_v45  ;;  %v369_v49 = vand.u32 2147483648, %v357_v45  ;;  %v367_v51 = vand.u32 2147483647, %v357_v45  ;;  %vm363_vm6 = vweird.f32 %v357_v45 }
 0x29d   : > { %v370_v53 = vor.u32 1.1754944e-38, %v369_v49  ;;  %vm368_vm8 = vcmp.eq.f32.partialorder %v367_v51, 8.507059e+37 }
 0x2a1   : > { %v578_v46 = vpop.eup %577 }
 0x2a2   : > { %v359_v47 = vmul.f32 %v578_v46, %v357_v45  ;;  %vm364_vm5 = vweird.f32 %v578_v46 }
 0x2a3   : > { %vm365_vm7 = vmor %vm363_vm6, %vm364_vm5 }
 0x2a4   : > { %v360_v48 = vsub.f32 1.0, %v359_v47 }
 0x2a6   : > { %v361_v50 = vmul.f32 %v578_v46, %v360_v48 }
 0x2a8   : > { %v362_v52 = vadd.f32 %v578_v46, %v361_v50 }
 0x2aa   : > { %v366_v54 = vsel %vm365_vm7, %v578_v46, %v362_v52 }
 0x2ab   : > { %v371_v56 = vsel %vm368_vm8, %v370_v53, %v366_v54 }
 0x2ac   : > { %v372_v57 = vmul.f32 %v371_v56, %v350_v55 }
 0x2ae   : > { %373 = vst.msk [vmem:[%s191_s29] sm:$0x1] %vm200_vm4, %v372_v57 }
 0x2af   : > { %666 = shalt.err (!%p663_p0)
}
 0x2b0   : > { %498 = dma.vmem_to_hbm [thread:$0]  (%p825_p5), %s386_s4, 16, %s388_s5, %s375_s7  }
 0x2b1 PF: > { %s399_s23 = sand.u32 1, %s705_s9   ;;  %p509_p3 = pnand %p478_p9, %p795_p6 }
 0x2b2   : > { %s400_s25 = scalar_lea.sflag [#allocation7], %s399_s23 }
 0x2b3   : > { %p510_p7 = pneg %p509_p3 }
 0x2b5   : > { %700 = dma.done.wait (%p510_p7), %s400_s25, 16  }
 0x2b6   : > { %702 = vsyncadd (%p510_p7), %s400_s25, 4294967280  ;;  %s19_s14 = sadd.s32 1, %s725_s14   ;;  %s917_s9 = smov %s709_s10 }
 0x2b7   : > { %p16_p10 = scmp.ge.s32.totalorder %s19_s14, 4   ;;  %s918_s10 = smov %s713_s11 }
 0x2b8   : > { %s919_s11 = smov %s834_s6  ;;  %s920_s12 = smov %s721_s13 }
 0x2b9   : > { %s921_s13 = smov %s923_s27  ;;  %18 = sbr.rel (!%p16_p10) target bundleno = 7 (0x7), region = 85 }
 0x2be   :  { %405 = vsyncpa [#allocation6], 1 }
 0x2bf   :  { %407 = vsyncpa [#allocation6 + $0x1], 1 }
 0x2c0   :  { %408 = vsyncpa [#allocation9], 1 }
 0x2c1   :  { %409 = vsyncpa [#allocation7], 1 }
 0x2c2   :  { %411 = vsyncpa [#allocation7 + $0x1], 1 }

</bundles_post_ra>
